<compile_context>
chip_gen: v7x
topology: tpu7x:2x2x1
jax: 0.10.0
libtpu: 0.0.40
codegen_flags: <defaults>
</compile_context>

<pallas_src>
import jax
import jax.numpy as jnp
from jax import lax
from jax.experimental import pallas as pl
from jax.experimental.pallas import tpu as pltpu

BN_EPS = 1e-5
MAX_TILE_B = 4096  # upper bound on the batch tile (lanes); multiple of 128


def _choose_tile_b(batch, *, max_tile=MAX_TILE_B):
    """Pick a batch tile: large (multiple of 128) but with >=2, ideally even,
    grid steps so both v7x TensorCores get work via the 'parallel' axis."""
    n_tiles = max(2, pl.cdiv(batch, max_tile))
    if n_tiles > 2 and n_tiles % 2:
        n_tiles += 1
    tile = ((pl.cdiv(batch, n_tiles) + 127) // 128) * 128
    return int(max(128, min(max_tile, tile)))


def dense_model_kernel(x_ref, w1t_ref, b1_ref, w2t_ref, b2_ref, w3t_ref, b3_ref,
                       out_ref):
    # x block arrives in its natural (tile_b, in_dim) layout -- no host transpose.
    xb = x_ref[...]                                                    # (TB, in)

    # Linear(in -> 16) + ReLU.  Transposed-RHS matmul puts batch on the lane
    # axis: h1[f, b] = sum_k w1t[f, k] * x[b, k]  (same pattern as q @ k^T).
    h1 = lax.dot_general(w1t_ref[...], xb, (((1,), (1,)), ((), ())),
                         preferred_element_type=jnp.float32)           # (16, TB)
    h1 = jnp.maximum(h1 + b1_ref[...], 0.0).astype(w2t_ref.dtype)

    # Linear(16 -> 32) + ReLU (f32 accumulation on the MXU).
    h2 = jnp.dot(w2t_ref[...], h1, preferred_element_type=jnp.float32) + b2_ref[...]
    h2 = jnp.maximum(h2, 0.0).astype(w3t_ref.dtype)                    # (32, TB)

    # Linear(32 -> out_dim); lane-dense (out_dim, TB) store.
    out = jnp.dot(w3t_ref[...], h2, preferred_element_type=jnp.float32) + b3_ref[...]
    out_ref[...] = out.astype(out_ref.dtype)


def dense_model_forward(x, params, *, tile_b=None, max_tile_b=MAX_TILE_B):
    B, in_dim = x.shape
    out_dim = params["w3"].shape[1]
    stream_dtype = x.dtype  # pass bf16 x on v6e/v7x to halve HBM streaming

    # --- Host-side: fold eval-mode BatchNorm1d into the first linear layer ---
    # y = (x - mean) * gamma / sqrt(var+eps) + beta  ==  x * s + t
    s = params["gamma"] * jax.lax.rsqrt(params["var"] + BN_EPS)        # (1, in)
    t = params["beta"] - params["mean"] * s                            # (1, in)
    w1_fold = params["w1"] * s.T                                       # (in, 16)
    b1_fold = params["b1"] + t @ params["w1"]                          # (1, 16)

    # Transposed (feature-major) parameter layout; weights follow x's dtype,
    # biases / accumulation stay f32.
    w1t = w1_fold.T.astype(stream_dtype)          # (16, in)
    w2t = params["w2"].T.astype(stream_dtype)     # (32, 16)
    w3t = params["w3"].T.astype(stream_dtype)     # (out_dim, 32)
    b1c = b1_fold.T.astype(jnp.float32)           # (16, 1)
    b2c = params["b2"].T.astype(jnp.float32)      # (32, 1)
    b3c = params["b3"].T.astype(jnp.float32)      # (out_dim, 1)

    if tile_b is None:
        tile_b = _choose_tile_b(B, max_tile=max_tile_b)
    if tile_b >= B:
        tile_b = B            # single block; block dim == array dim is allowed
    n_tiles = pl.cdiv(B, tile_b)
    # Note: no jnp.pad of x.  If B % tile_b != 0 the ragged last block's extra
    # rows read unspecified values; every output column depends only on its own
    # input column (no cross-lane ops) and OOB output writes are masked, so
    # this is safe.  Do NOT add cross-lane reductions without restoring masking.

    full = lambda a: pl.BlockSpec(a.shape, lambda i: (0, 0))

    x_bytes = int(jnp.dtype(stream_dtype).itemsize)
    cost = pl.CostEstimate(
        flops=2 * B * (in_dim * 16 + 16 * 32 + 32 * out_dim),
        transcendentals=0,
        bytes_accessed=(B * in_dim * x_bytes + B * out_dim * 4
                        + x_bytes * (w1t.size + w2t.size + w3t.size)
                        + 4 * (b1c.size + b2c.size + b3c.size)),
    )

    out_t = pl.pallas_call(
        dense_model_kernel,
        out_shape=jax.ShapeDtypeStruct((out_dim, B), jnp.float32),
        grid=(n_tiles,),
        in_specs=[
            pl.BlockSpec((tile_b, in_dim), lambda i: (i, 0)),   # natural-layout x tile
            full(w1t), full(b1c),                               # weights: VMEM-resident
            full(w2t), full(b2c),
            full(w3t), full(b3c),
        ],
        out_specs=pl.BlockSpec((out_dim, tile_b), lambda i: (0, i)),   # lane-dense
        compiler_params=pltpu.CompilerParams(
            dimension_semantics=("parallel",),   # shards batch tiles across TCs on v7x
        ),
        cost_estimate=cost,
    )(x, w1t, b1c, w2t, b2c, w3t, b3c)

    return out_t.T                                                     # (B, out_dim)


def init_params(key, input_dim=10, output_dim=1):
    ks = jax.random.split(key, 6)

    def linear_init(kw, kb, fan_in, fan_out):
        # torch.nn.Linear default init: U(-1/sqrt(fan_in), 1/sqrt(fan_in))
        bound = 1.0 / jnp.sqrt(fan_in)
        w = jax.random.uniform(kw, (fan_in, fan_out), jnp.float32, -bound, bound)
        b = jax.random.uniform(kb, (1, fan_out), jnp.float32, -bound, bound)
        return w, b

    w1, b1 = linear_init(ks[0], ks[1], input_dim, 16)
    w2, b2 = linear_init(ks[2], ks[3], 16, 32)
    w3, b3 = linear_init(ks[4], ks[5], 32, output_dim)

    return {
        # BatchNorm1d default init (eval-mode running stats)
        "gamma": jnp.ones((1, input_dim), jnp.float32),
        "beta": jnp.zeros((1, input_dim), jnp.float32),
        "mean": jnp.zeros((1, input_dim), jnp.float32),
        "var": jnp.ones((1, input_dim), jnp.float32),
        "w1": w1, "b1": b1,
        "w2": w2, "b2": b2,
        "w3": w3, "b3": b3,
    }


def reference_forward(x, p):
    xn = (x - p["mean"]) * jax.lax.rsqrt(p["var"] + BN_EPS) * p["gamma"] + p["beta"]
    h1 = jnp.maximum(xn @ p["w1"] + p["b1"], 0.0)
    h2 = jnp.maximum(h1 @ p["w2"] + p["b2"], 0.0)
    return h2 @ p["w3"] + p["b3"]


if __name__ == "__main__":
    key = jax.random.PRNGKey(0)
    k_x, k_p = jax.random.split(key)

    B, INPUT_DIM, OUTPUT_DIM = 256, 10, 1   # -> 2 grid steps (both v7x cores busy)
    x = jax.random.normal(k_x, (B, INPUT_DIM), jnp.float32)
    params = init_params(k_p, INPUT_DIM, OUTPUT_DIM)

    out = dense_model_forward(x, params)
    out = jax.block_until_ready(out)

    ref = reference_forward(x, params)
    assert out.shape == (B, OUTPUT_DIM), out.shape
    assert jnp.allclose(out, ref, atol=1e-5, rtol=1e-5), (out, ref)

    print("KERNEL_OK")
</pallas_src>

<mosaic_0001>
module attributes {stable_mosaic.version = 11 : i64} {
  func.func @dense_model_kernel(%arg0: i32, %arg1: memref<128x10xf32, #tpu.memory_space<vmem>>, %arg2: memref<16x10xf32, #tpu.memory_space<vmem>>, %arg3: memref<16x1xf32, #tpu.memory_space<vmem>>, %arg4: memref<32x16xf32, #tpu.memory_space<vmem>>, %arg5: memref<32x1xf32, #tpu.memory_space<vmem>>, %arg6: memref<1x32xf32, #tpu.memory_space<vmem>>, %arg7: memref<1x1xf32, #tpu.memory_space<vmem>>, %arg8: memref<1x128xf32, #tpu.memory_space<vmem>>) attributes {dimension_semantics = [#tpu.dimension_semantics<parallel>], iteration_bounds = array<i64: 2>, scalar_prefetch = 0 : i64, scratch_operands = 0 : i64, tpu.core_type = #tpu.core_type<tc>, window_params = [{transform_indices = @transform_0, window_bounds = array<i64: 128, 10>}, {pipeline_mode = #tpu.pipeline_mode<synchronous>, transform_indices = @transform_1, window_bounds = array<i64: 16, 10>}, {pipeline_mode = #tpu.pipeline_mode<synchronous>, transform_indices = @transform_2, window_bounds = array<i64: 16, 1>}, {pipeline_mode = #tpu.pipeline_mode<synchronous>, transform_indices = @transform_3, window_bounds = array<i64: 32, 16>}, {pipeline_mode = #tpu.pipeline_mode<synchronous>, transform_indices = @transform_4, window_bounds = array<i64: 32, 1>}, {pipeline_mode = #tpu.pipeline_mode<synchronous>, transform_indices = @transform_5, window_bounds = array<i64: 1, 32>}, {pipeline_mode = #tpu.pipeline_mode<synchronous>, transform_indices = @transform_6, window_bounds = array<i64: 1, 1>}, {transform_indices = @transform_7, window_bounds = array<i64: 1, 128>}]} {
    %c0 = arith.constant 0 : index
    %c0_0 = arith.constant 0 : index
    %0 = vector.load %arg1[%c0, %c0_0] : memref<128x10xf32, #tpu.memory_space<vmem>>, vector<128x10xf32>
    %c0_1 = arith.constant 0 : index
    %c0_2 = arith.constant 0 : index
    %1 = vector.load %arg2[%c0_1, %c0_2] : memref<16x10xf32, #tpu.memory_space<vmem>>, vector<16x10xf32>
    %cst = arith.constant dense<0.000000e+00> : vector<16x128xf32>
    %2 = tpu.matmul %1, %0, %cst {dimension_numbers = #tpu.dot_dimension_numbers<[1], [1], [0], [0], [0, 0, 1, 0], [], []>} : vector<16x10xf32>, vector<128x10xf32>, vector<16x128xf32> -> vector<16x128xf32>
    %c0_3 = arith.constant 0 : index
    %c0_4 = arith.constant 0 : index
    %3 = vector.load %arg3[%c0_3, %c0_4] : memref<16x1xf32, #tpu.memory_space<vmem>>, vector<16x1xf32>
    %4 = vector.broadcast %3 : vector<16x1xf32> to vector<16x128xf32>
    %5 = arith.addf %2, %4 : vector<16x128xf32>
    %cst_5 = arith.constant 0.000000e+00 : f32
    %6 = vector.broadcast %cst_5 : f32 to vector<16x128xf32>
    %7 = arith.maximumf %5, %6 : vector<16x128xf32>
    %c0_6 = arith.constant 0 : index
    %c0_7 = arith.constant 0 : index
    %8 = vector.load %arg4[%c0_6, %c0_7] : memref<32x16xf32, #tpu.memory_space<vmem>>, vector<32x16xf32>
    %cst_8 = arith.constant dense<0.000000e+00> : vector<32x128xf32>
    %9 = tpu.matmul %8, %7, %cst_8 {dimension_numbers = #tpu.dot_dimension_numbers<[1], [0], [0], [1], [0, 0, 1, 1], [], []>} : vector<32x16xf32>, vector<16x128xf32>, vector<32x128xf32> -> vector<32x128xf32>
    %c0_9 = arith.constant 0 : index
    %c0_10 = arith.constant 0 : index
    %10 = vector.load %arg5[%c0_9, %c0_10] : memref<32x1xf32, #tpu.memory_space<vmem>>, vector<32x1xf32>
    %11 = vector.broadcast %10 : vector<32x1xf32> to vector<32x128xf32>
    %12 = arith.addf %9, %11 : vector<32x128xf32>
    %cst_11 = arith.constant 0.000000e+00 : f32
    %13 = vector.broadcast %cst_11 : f32 to vector<32x128xf32>
    %14 = arith.maximumf %12, %13 : vector<32x128xf32>
    %c0_12 = arith.constant 0 : index
    %c0_13 = arith.constant 0 : index
    %15 = vector.load %arg6[%c0_12, %c0_13] : memref<1x32xf32, #tpu.memory_space<vmem>>, vector<1x32xf32>
    %cst_14 = arith.constant dense<0.000000e+00> : vector<1x128xf32>
    %16 = tpu.matmul %15, %14, %cst_14 {dimension_numbers = #tpu.dot_dimension_numbers<[1], [0], [0], [1], [0, 0, 1, 1], [], []>} : vector<1x32xf32>, vector<32x128xf32>, vector<1x128xf32> -> vector<1x128xf32>
    %c0_15 = arith.constant 0 : index
    %c0_16 = arith.constant 0 : index
    %17 = vector.load %arg7[%c0_15, %c0_16] : memref<1x1xf32, #tpu.memory_space<vmem>>, vector<1x1xf32>
    %18 = vector.broadcast %17 : vector<1x1xf32> to vector<1x128xf32>
    %19 = arith.addf %16, %18 : vector<1x128xf32>
    %c0_17 = arith.constant 0 : index
    %c0_18 = arith.constant 0 : index
    %20 = vector.load %arg8[%c0_17, %c0_18] : memref<1x128xf32, #tpu.memory_space<vmem>>, vector<1x128xf32>
    tpu.vector_store %arg8[%c0_17, %c0_18], %19 {strides = array<i32>} : memref<1x128xf32, #tpu.memory_space<vmem>>, vector<1x128xf32>,
    return
  }
  func.func @transform_0(%arg0: i32) -> (i32, i32) {
    %c0_i32 = arith.constant 0 : i32
    %c0_i32_0 = arith.constant 0 : i32
    return %arg0, %c0_i32 : i32, i32
  }
  func.func @transform_1(%arg0: i32) -> (i32, i32) {
    %c0_i32 = arith.constant 0 : i32
    %c0_i32_0 = arith.constant 0 : i32
    %c0_i32_1 = arith.constant 0 : i32
    return %c0_i32, %c0_i32_0 : i32, i32
  }
  func.func @transform_2(%arg0: i32) -> (i32, i32) {
    %c0_i32 = arith.constant 0 : i32
    %c0_i32_0 = arith.constant 0 : i32
    %c0_i32_1 = arith.constant 0 : i32
    return %c0_i32, %c0_i32_0 : i32, i32
  }
  func.func @transform_3(%arg0: i32) -> (i32, i32) {
    %c0_i32 = arith.constant 0 : i32
    %c0_i32_0 = arith.constant 0 : i32
    %c0_i32_1 = arith.constant 0 : i32
    return %c0_i32, %c0_i32_0 : i32, i32
  }
  func.func @transform_4(%arg0: i32) -> (i32, i32) {
    %c0_i32 = arith.constant 0 : i32
    %c0_i32_0 = arith.constant 0 : i32
    %c0_i32_1 = arith.constant 0 : i32
    return %c0_i32, %c0_i32_0 : i32, i32
  }
  func.func @transform_5(%arg0: i32) -> (i32, i32) {
    %c0_i32 = arith.constant 0 : i32
    %c0_i32_0 = arith.constant 0 : i32
    %c0_i32_1 = arith.constant 0 : i32
    return %c0_i32, %c0_i32_0 : i32, i32
  }
  func.func @transform_6(%arg0: i32) -> (i32, i32) {
    %c0_i32 = arith.constant 0 : i32
    %c0_i32_0 = arith.constant 0 : i32
    %c0_i32_1 = arith.constant 0 : i32
    return %c0_i32, %c0_i32_0 : i32, i32
  }
  func.func @transform_7(%arg0: i32) -> (i32, i32) {
    %c0_i32 = arith.constant 0 : i32
    %c0_i32_0 = arith.constant 0 : i32
    return %c0_i32, %arg0 : i32, i32
  }
}

</mosaic_0001>

<bundles_post_ra>
// kernel: tpu_custom_call.1
= control target key start
LH: loop header
LB: loop body
LE: loop exit
PB: predicated region body
PF: predicated region fallthrough
CT: control target
= control target key end

     0   :  { %s1258_s0 = inlined_call_operand.vmem [shape: f32[256,10], index: 0, kind: input, shape index: {}]   ;;  %s1259_s1 = inlined_call_operand.vmem [shape: f32[16,10], index: 1, kind: input, shape index: {}]   ;;  %s1260_s2 = inlined_call_operand.vmem [shape: f32[16,1], index: 2, kind: input, shape index: {}]   ;;  %s1261_s3 = inlined_call_operand.vmem [shape: f32[32,16], index: 3, kind: input, shape index: {}]   ;;  %s1262_s4 = inlined_call_operand.vmem [shape: f32[32,1], index: 4, kind: input, shape index: {}]   ;;  %s1263_s5 = inlined_call_operand.vmem [shape: f32[1,32], index: 5, kind: input, shape index: {}]   ;;  %s1264_s6 = inlined_call_operand.<no memory space> [shape: f32[1,1], index: 6, kind: input, shape index: {}]   ;;  %s1265_s7 = inlined_call_operand.hbm [shape: f32[1,256], index: 7, kind: output, shape index: {}]  }
   0x1   :  { %v12_v0 = vstv %s1264_s6 }
   0x2   :  { %13 = vst [vmem:[#allocation2] sm:$0x1] %v12_v0 }
   0x3   :  { %14 = vsyncpa [#allocation4], 0 }
   0x4   :  { %16 = vsyncpa [#allocation4 + $0x1], 0  ;;  %s1058_s26 = smov 0   ;;  %s1060_s27 = smov 0  }
   0x5   :  { %s1062_s28 = smov 0   ;;  %s1064_s29 = smov 0  }
   0x6 LB: > { %s725_s6 = sadd.s32 4294967295, %s1008_s29   ;;  %s726_s30 = sadd.s32 4294967294, %s1008_s29   ;;  %s1008_s29 = sphi %s1064_s29, %s1273_s29   ;;  %s1004_s28 = sphi %s1062_s28, %s1272_s28   ;;  %s1000_s27 = sphi %s1060_s27, %s1271_s27   ;;  %s996_s26 = sphi %s1058_s26, %s1270_s26  }
   0x7   : > { %s1081_s8 = sadd.s32 1, %s1008_s29   ;;  %s181_s9 = sadd.s32 1, %s1004_s28 }
   0x8   : > { %s178_s10 = ssub.s32 %s1008_s29, %s1081_s8  ;;  %p191_p0 = scmp.ne.s32.totalorder %s1004_s28, %s1000_s27 }
   0x9   : > { %p179_p1 = scmp.eq.s32.totalorder %s178_s10, 0  ;;  %p192_p2 = scmp.eq.s32.totalorder %s725_s6, 1 }
   0xa   : > { %p197_p3 = scmp.ne.s32.totalorder %s1000_s27, %s996_s26  ;;  %p198_p4 = scmp.eq.s32.totalorder %s726_s30, 1 }
   0xb   : > { %s1091_s11 = scalar_select %p179_p1, %s1004_s28, %s181_s9  }
   0xc   : > { %p1093_p5 = por %p192_p2, %p191_p0  ;;  %p1097_p6 = por %p198_p4, %p197_p3 }
   0xd   : > { %p729_p7 = scmp.ge.s32.totalorder %s1008_s29, 1  ;;  %p243_p8 = scmp.lt.s32.totalorder %s1008_s29, 3 }
   0xf   : > { %p244_p9 = pnand %p729_p7, %p243_p8 }
  0x10   : > { %s1103_s14 = sshll.u32 (!%p244_p9), %s725_s6, 4  ;;  %vm310_vm0 = vcmask (!%p244_p9), 80896   ;;  %v296_v1 = vld [vmem:[%s1259_s1] sm:$0xff] (!%p244_p9)  ;;  %v1010_v3 = vmov (!%p244_p9), 0   ;;  %v299_v4 = vld [vmem:[%s1260_s2 + $0x8] sm:$0xff] (!%p244_p9)  ;;  %v448_v6 = vld [vmem:[%s1262_s4 + $0x10] sm:$0xff] (!%p244_p9) }
  0x11   : > { %247 = sbr.rel (%p244_p9) target bundleno = 772 (0x304), region = 48  ;;  %v298_v2 = vld [vmem:[%s1260_s2] sm:$0xff] (!%p244_p9)  ;;  %p275_p10 = scmp.lt.s32.totalorder (!%p244_p9), %s1103_s14, 31  ;;  %819 = vmatprep.mubr.msk.f32.mxu0 (!%p244_p9), %vm310_vm0, %v296_v1  ;;  %944 = vset.pattern.permute.xlu0 (!%p244_p9), %v1010_v3  ;;  %vm1124_vm1 = vmpackc.low (!%p244_p9), %vm310_vm0, %vm310_vm0  ;;  %v297_v32 = vld [vmem:[%s1259_s1 + $0x8] sm:$0xff] (!%p244_p9)  ;;  %vm470_vm2 = vcmask (!%p244_p9), 130048   ;;  %v1011_v49 = vmov (!%p244_p9), 0.0|0.0  }
  0x12   : > { %302 = vperm.xlu0 (!%p244_p9), %944, %v298_v2   ;;  %945 = vset.pattern.permute.xlu1 (!%p244_p9), %v1010_v3  ;;  %v573_v13 = vld [vmem:[#allocation2] sm:$0x1] (!%p244_p9)  ;;  %v447_v35 = vld [vmem:[%s1262_s4 + $0x8] sm:$0xff] (!%p244_p9)  ;;  %v449_v36 = vld [vmem:[%s1262_s4 + $0x18] sm:$0xff] (!%p244_p9)  ;;  %vm1012_vm3 = vmmov (!%p244_p9), 0   ;;  %v1013_v50 = vmov (!%p244_p9), 0.0   ;;  %s1216_s21 = scalar_lea.hbm (!%p244_p9), %s1265_s7, %s1103_s14 }
  0x13   : > { %v442_v33 = vld [vmem:[%s1261_s3] sm:$0xff] (!%p244_p9)  ;;  %v443_v46 = vld [vmem:[%s1261_s3 + $0x8] sm:$0xff] (!%p244_p9)  ;;  %v444_v47 = vld [vmem:[%s1261_s3 + $0x10] sm:$0xff] (!%p244_p9)  ;;  %vm583_vm4 = vcmask (!%p244_p9), 261120   ;;  %s272_s16 = sand.u32 (!%p244_p9), 1, %s1000_s27   ;;  %s1014_s24 = smov (!%p244_p9), [#allocation3]  }
  0x14   : > { %826 = vmatprep.mubr.msk.f32.mxu1 (!%p244_p9), %vm470_vm2, %v442_v33  ;;  %v446_v34 = vld [vmem:[%s1262_s4] sm:$0xff] (!%p244_p9)  ;;  %v445_v48 = vld [vmem:[%s1261_s3 + $0x18] sm:$0xff] (!%p244_p9)  ;;  %s273_s17 = scalar_lea.vmem (!%p244_p9), [#allocation3], %s272_s16 }
  0x15   : > { %452 = vperm.xlu1 (!%p244_p9), %945, %v446_v34   ;;  %v572_v5 = vld [vmem:[%s1263_s5] sm:$0x1] (!%p244_p9)  ;;  %s671_s18 = sshll.u32 (!%p244_p9), %s273_s17, 4  ;;  %s1218_s18 = int_to_ptr.vmem [resolvable:$true] %s671_s18 }
  0x16   : > { %307 = vperm.xlu0 (!%p244_p9), %944, %v299_v4   ;;  %s946_s23 = scalar_lea.vmem (!%p244_p9), %s1218_s18, 16 }
  0x17   : > { %p947_p11 = scmp.ne.s32.totalorder (!%p244_p9), %s1218_s18, %s946_s23 }
  0x18   : > { %s276_s19 = scalar_select %p275_p10, %s1103_s14, 31 }
  0x19   : > { %457 = vperm.xlu1 %945, %v447_v35   ;;  %p948_p12 = pnand %p947_p11, %p1093_p5 }
  0x1a   : > { %s731_s22 = sshll.u32 %s276_s19, 3  ;;  %462 = vperm.xlu0 %944, %v448_v6   ;;  %v579_v6 = vlaneseq }
  0x1b   : > { %s1120_s25 = scalar_lea.vmem %s1258_s0, %s731_s22  ;;  %s659_s22 = scalar_lea.sflag [#allocation4], %s272_s16 }
  0x1c   : > { %v280_v7 = vld [vmem:[%s1120_s25] sm:$0xff]  ;;  %v281_v8 = vld [vmem:[%s1120_s25 + $0x8] sm:$0xff]  ;;  %v282_v9 = vld [vmem:[%s1120_s25 + $0x10] sm:$0xff]  ;;  %p949_p13 = pneg %p948_p12 }
  0x1d   : > { %v843_v10 = vpack.c.bf16 %v281_v8, %v280_v7  ;;  %v283_v11 = vld [vmem:[%s1120_s25 + $0x18] sm:$0xff]  ;;  %v284_v14 = vld [vmem:[%s1120_s25 + $0x20] sm:$0xff]  ;;  %v285_v15 = vld [vmem:[%s1120_s25 + $0x28] sm:$0xff]  ;;  %467 = vperm.xlu1 %945, %v449_v36   ;;  %v580_v7 = vshrl.u32 %v579_v6, 7 }
  0x1e   : > { %v849_v12 = vpack.c.bf16 %v283_v11, %v282_v9  ;;  %576 = vperm.xlu0 %944, %v573_v13   ;;  %v855_v16 = vpack.c.bf16 %v285_v15, %v284_v14  ;;  %v286_v17 = vld [vmem:[%s1120_s25 + $0x30] sm:$0xff]  ;;  %v287_v18 = vld [vmem:[%s1120_s25 + $0x38] sm:$0xff]  ;;  %v288_v20 = vld [vmem:[%s1120_s25 + $0x40] sm:$0xff] }
  0x1f   : > { %845 = vmatprep.subr.msk.bf16.mxu0 %vm1124_vm1, %v843_v10  ;;  %v861_v19 = vpack.c.bf16 %v287_v18, %v286_v17  ;;  %v289_v21 = vld [vmem:[%s1120_s25 + $0x48] sm:$0xff]  ;;  %v290_v23 = vld [vmem:[%s1120_s25 + $0x50] sm:$0xff]  ;;  %v291_v24 = vld [vmem:[%s1120_s25 + $0x58] sm:$0xff]  ;;  %v581_v8 = vsub.s32 0, %v580_v7 }
  0x20   : > { %848 = vmatpush3.bf16.xpose.msk.msra.mxu0 %vm1124_vm1, %v843_v10  ;;  %v867_v22 = vpack.c.bf16 %v289_v21, %v288_v20  ;;  %v873_v25 = vpack.c.bf16 %v291_v24, %v290_v23  ;;  %v292_v26 = vld [vmem:[%s1120_s25 + $0x60] sm:$0xff]  ;;  %v293_v27 = vld [vmem:[%s1120_s25 + $0x68] sm:$0xff]  ;;  %v294_v29 = vld [vmem:[%s1120_s25 + $0x70] sm:$0xff] }
  0x21   : > { %851 = vmatprep.subr.msk.bf16.mxu0 %vm1124_vm1, %v849_v12  ;;  %v879_v28 = vpack.c.bf16 %v293_v27, %v292_v26  ;;  %v295_v30 = vld [vmem:[%s1120_s25 + $0x78] sm:$0xff]  ;;  %s950_s25 = sshll.u32 %s1014_s24, 4  ;;  %s951_s25 = int_to_ptr.vmem [resolvable:$false] %s950_s25 }
  0x22   : > { %v885_v31 = vpack.c.bf16 %v295_v30, %v294_v29  ;;  %s952_s6 = scalar_lea.vmem %s951_s25, 32  ;;  %p953_p0 = scmp.lt.s32.totalorder %s1218_s18, %s951_s25 }
  0x23   : > { %p954_p1 = scmp.lt.s32.totalorder %s952_s6, %s946_s23 }
  0x25   : > { %p955_p2 = por %p954_p1, %p953_p0 }
  0x27   : > { %p956_p3 = pnand %p955_p2, %p949_p13 }
  0x28   : > { %854 = vmatpush3.bf16.xpose.msk.msra.mxu0 %vm1124_vm1, %v849_v12 }
  0x29   : > { %857 = vmatprep.subr.msk.bf16.mxu0 %vm1124_vm1, %v855_v16 }
  0x30   : > { %860 = vmatpush3.bf16.xpose.msk.msra.mxu0 %vm1124_vm1, %v855_v16 }
  0x31   : > { %863 = vmatprep.subr.msk.bf16.mxu0 %vm1124_vm1, %v861_v19 }
  0x38   : > { %866 = vmatpush3.bf16.xpose.msk.msra.mxu0 %vm1124_vm1, %v861_v19 }
  0x39   : > { %869 = vmatprep.subr.msk.bf16.mxu0 %vm1124_vm1, %v867_v22 }
  0x40   : > { %872 = vmatpush3.bf16.xpose.msk.msra.mxu0 %vm1124_vm1, %v867_v22 }
  0x41   : > { %875 = vmatprep.subr.msk.bf16.mxu0 %vm1124_vm1, %v873_v25 }
  0x48   : > { %878 = vmatpush3.bf16.xpose.msk.msra.mxu0 %vm1124_vm1, %v873_v25 }
  0x49   : > { %881 = vmatprep.subr.msk.bf16.mxu0 %vm1124_vm1, %v879_v28 }
  0x50   : > { %884 = vmatpush3.bf16.xpose.msk.msra.mxu0 %vm1124_vm1, %v879_v28 }
  0x51   : > { %887 = vmatprep.subr.msk.bf16.mxu0 %vm1124_vm1, %v885_v31 }
  0x58   : > { %890 = vmatpush3.bf16.xpose.msk.msra.mxu0 %vm1124_vm1, %v885_v31 }
  0x5f   : > { %820 = vmatmul.mubr.msk.f32.vlgmr.msra.gmra.mrb[0].mxu0 %vm310_vm0, %v297_v32 }
  0x91   : > { %v303_v37 = vpop.permute.xlu0 %302 }
  0x94   : > { %v453_v51 = vpop.permute.xlu1 %452 }
  0x95   : > { %v308_v38 = vpop.permute.xlu0 %307 }
  0x98   : > { %v458_v52 = vpop.permute.xlu1 %457 }
  0x99   : > { %v463_v61 = vpop.permute.xlu0 %462 }
  0x9c   : > { %v468_v58 = vpop.permute.xlu1 %467 }
  0x9d   : > { %v577_v9 = vpop.permute.xlu0 %576 }
  0x9e   : > { %v582_v10 = vrot.slane %v577_v9, %v581_v8 }
 0x132   : > { %v821_v39 = vpop.f32.mrb[0].mxu0 }
 0x133   : > { %v437_v40 = vadd.f32 %v821_v39, %v308_v38  ;;  %v431_v41 = vpop.f32.mrb[1].mxu0 }
 0x134   : > { %v432_v42 = vadd.f32 %v431_v41, %v303_v37 }
 0x135   : > { %v441_v43 = vmax.f32 %v437_v40, 0.0 }
 0x136   : > { %v440_v44 = vmax.f32 %v432_v42, 0.0 }
 0x138   : > { %v891_v45 = vpack.c.bf16 %v441_v43, %v440_v44 }
 0x13a   : > { %892 = vmatprep.subr.bf16.mxu1 %v891_v45 }
 0x13b   : > { %894 = vmatpush3.bf16.msra.mxu1 %v891_v45 }
 0x13c   : > { %895 = vmatprep.subr.bf16.mxu1 %v1011_v49 }
 0x13e   : > { %827 = vmatmul.mubr.msk.f32.vlgmr.msra.gmra.mrb[0].mxu1 %vm470_vm2, %v443_v46 }
 0x13f   : > { %829 = vmatprep.mubr.msk.f32.mxu1 %vm470_vm2, %v444_v47 }
 0x142   : > { %830 = vmatmul.mubr.msk.f32.gmra.mrb[2].mxu1 %vm470_vm2, %v445_v48 }
 0x143   : > { %840 = vmatprep.mubr.msk.f32.mxu1 %vm1012_vm3, %v1013_v50 }
 0x211   : > { %v828_v53 = vpop.f32.mrb[0].mxu1 }
 0x212   : > { %v555_v54 = vadd.f32 %v828_v53, %v458_v52  ;;  %v549_v55 = vpop.f32.mrb[1].mxu1 }
 0x213   : > { %v550_v56 = vadd.f32 %v549_v55, %v453_v51 }
 0x214   : > { %v569_v57 = vmax.f32 %v555_v54, 0.0 }
 0x215   : > { %v568_v59 = vmax.f32 %v550_v56, 0.0  ;;  %v831_v60 = vpop.f32.mrb[2].mxu1 }
 0x216   : > { %v565_v62 = vadd.f32 %v831_v60, %v468_v58  ;;  %v559_v63 = vpop.f32.mrb[3].mxu1 }
 0x217   : > { %v896_v0 = vpack.c.bf16 %v569_v57, %v568_v59  ;;  %v560_v1 = vadd.f32 %v559_v63, %v463_v61 }
 0x218   : > { %v571_v2 = vmax.f32 %v565_v62, 0.0 }
 0x219   : > { %v570_v3 = vmax.f32 %v560_v1, 0.0  ;;  %897 = vmatpush3.bf16.msra.mxu1 %v896_v0 }
 0x21a   : > { %898 = vmatprep.subr.bf16.mxu1 %v1011_v49 }
 0x21b   : > { %v899_v4 = vpack.c.bf16 %v571_v2, %v570_v3 }
 0x21d   : > { %900 = vmatpush3.bf16.msra.mxu1 %v899_v4 }
 0x220   : > { %841 = vmatmul.mubr.msk.f32.vlgmr.msra.gmra.mrb[4].mxu1 %vm583_vm4, %v572_v5 }
 0x2f3   : > { %v653_v11 = vpop.f32.mrb[4].mxu1 }
 0x2f4   : > { %v654_v12 = vadd.f32 %v653_v11, %v582_v10  ;;  %v842_v13 = vpop.f32.mrb[5].mxu1 }
 0x2f6   : > { %657 = vst [vmem:[%s273_s17] sm:$0x1] %v654_v12 }
 0x2f7   : > { %959 = shalt.err (!%p956_p3)
}
 0x2f8   : > { %s960_s14 = scalar_lea.hbm %s1216_s21, 16  ;;  %s964_s10 = scalar_lea.hbm %s1265_s7, 32 }
 0x2f9   : > { %p961_p4 = scmp.ne.s32.totalorder %s1216_s21, %s960_s14  ;;  %p965_p9 = scmp.lt.u32.totalorder %s1216_s21, %s1265_s7 }
 0x2fa   : > { %p966_p10 = scmp.lt.u32.totalorder %s964_s10, %s960_s14  ;;  %p968_p12 = scmp.lt.u32.totalorder %s960_s14, %s1216_s21 }
 0x2fb   : > { %p962_p7 = pnand %p961_p4, %p1093_p5 }
 0x2fc   : > { %p967_p11 = por %p966_p10, %p965_p9 }
 0x2fd   : > { %p963_p8 = pneg %p962_p7 }
 0x2fe   : > { %p969_p13 = por %p968_p12, %p967_p11 }
 0x300   : > { %p970_p0 = pnand %p969_p13, %p963_p8 }
 0x302   : > { %973 = shalt.err (!%p970_p0)
}
 0x303   : > { %901 = dma.vmem_to_hbm [thread:$0]  (%p1093_p5), %s1218_s18, 16, %s1216_s21, %s659_s22  }
 0x304 PF: > { %p907_p1 = scmp.ge.s32.totalorder %s1008_s29, 2  ;;  %s683_s17 = sand.u32 1, %s996_s26  }
 0x305   : > { %s684_s19 = scalar_lea.sflag [#allocation4], %s683_s17 }
 0x306   : > { %p904_p2 = pnand %p907_p1, %p1097_p6 }
 0x308   : > { %991 = dma.done.wait (!%p904_p2), %s684_s19, 16  }
 0x309   : > { %993 = vsyncadd (!%p904_p2), %s684_s19, 4294967280  ;;  %p19_p3 = scmp.ge.s32.totalorder %s1081_s8, 4   ;;  %s1270_s26 = smov %s1000_s27 }
 0x30a   : > { %s1271_s27 = smov %s1004_s28  ;;  %s1272_s28 = smov %s1091_s11 }
 0x30b   : > { %s1273_s29 = smov %s1081_s8  ;;  %21 = sbr.rel (!%p19_p3) target bundleno = 6 (0x6), region = 83 }
 0x312   :  { %688 = vsyncpa [#allocation4], 1 }
 0x313   :  { %690 = vsyncpa [#allocation4 + $0x1], 1 }

</bundles_post_ra>
